<compile_context>
chip_gen: v6e
topology: v6e:2x2x1
jax: 0.10.0
libtpu: 0.0.40
codegen_flags: <defaults>
</compile_context>

<pallas_src>
import functools
import math

import jax
import jax.numpy as jnp
from jax.experimental import pallas as pl
from jax.experimental.pallas import tpu as pltpu

FEATURES = 768
EPS = 1e-6


def _round_up(n, m):
    return ((n + m - 1) // m) * m


def _layernorm_kernel(x_ref, gamma_ref, beta_ref, o_ref, *, eps, n_features):
    x = x_ref[...].astype(jnp.float32)                        # (TR, F)

    # Two independent cross-lane reductions (sum, sum of squares) so the XLU
    # work can overlap; avoids materializing (x - mean) before reducing.
    inv_f = 1.0 / float(n_features)
    mean = jnp.sum(x, axis=-1, keepdims=True) * inv_f          # (TR, 1)
    mean_sq = jnp.sum(x * x, axis=-1, keepdims=True) * inv_f   # (TR, 1)
    var = jnp.maximum(mean_sq - mean * mean, 0.0)              # unbiased=False
    std = jnp.sqrt(var)                                        # (TR, 1)

    # Per-row reciprocal of the (TR,1) column on the EUP (separate VLIW slot),
    # plus one Newton-Raphson step to recover full f32 precision. Cheaper than
    # a full-width (TR, F) divide on the VPU.
    denom = std + eps                                          # eps outside sqrt (module spec)
    inv = pl.reciprocal(denom, approx=True)
    inv = inv * (2.0 - denom * inv)

    gamma = gamma_ref[...].astype(jnp.float32)                 # (1, F)
    beta = beta_ref[...].astype(jnp.float32)                   # (1, F)

    y = (x - mean) * inv * gamma + beta
    o_ref[...] = y.astype(o_ref.dtype)


def layernorm(x, gamma, beta, *, eps=EPS, row_block=1024):
    """x: (..., F) ; gamma, beta: (F,). Returns same shape/dtype as x."""
    orig_shape = x.shape
    F = orig_shape[-1]
    rows = int(math.prod(orig_shape[:-1]))  # empty prefix -> 1
    x2 = x.reshape(rows, F)
    g2 = gamma.reshape(1, F)
    b2 = beta.reshape(1, F)

    # Large row tiles keep the HBM pipeline full; clamp for small inputs and
    # keep the tile a multiple of 8 (sublane). Pad rows instead of asserting.
    rb = min(row_block, _round_up(rows, 8))
    padded_rows = _round_up(rows, rb)
    if padded_rows != rows:
        # Zero padding rows are harmless: rows are independent; padded output
        # is sliced off below. (std=0 -> 1/eps, finite.)
        x2 = jnp.pad(x2, ((0, padded_rows - rows), (0, 0)))

    out = pl.pallas_call(
        functools.partial(_layernorm_kernel, eps=eps, n_features=F),
        out_shape=jax.ShapeDtypeStruct((padded_rows, F), x.dtype),
        grid=(padded_rows // rb,),
        in_specs=[
            pl.BlockSpec((rb, F), lambda i: (i, 0)),
            pl.BlockSpec((1, F), lambda i: (0, 0)),   # gamma: DMA'd once, reused
            pl.BlockSpec((1, F), lambda i: (0, 0)),   # beta:  DMA'd once, reused
        ],
        out_specs=pl.BlockSpec((rb, F), lambda i: (i, 0)),
        compiler_params=pltpu.CompilerParams(
            dimension_semantics=("parallel",),
            # rb=1024: ~3 MiB/block x (in + out) x double-buffer ~= 12 MiB.
            # Raise the scoped limit (v5e default is 16 MiB) but stay well
            # under v7x's 64 MiB physical VMEM.
            vmem_limit_bytes=48 * 1024 * 1024,
        ),
    )(x2, g2, b2)

    if padded_rows != rows:
        out = out[:rows]
    return out.reshape(orig_shape)


if __name__ == "__main__":
    key = jax.random.PRNGKey(0)
    B, S, F = 2, 8, FEATURES
    x = jax.random.normal(key, (B, S, F), dtype=jnp.float32)

    # Parameters matching nn.Parameter(torch.ones/zeros(features)).
    gamma = jnp.ones((F,), dtype=jnp.float32)
    beta = jnp.zeros((F,), dtype=jnp.float32)

    y = layernorm(x, gamma, beta)
    y = jax.block_until_ready(y)

    # Plain-JAX reference mirroring the PyTorch forward exactly
    # (std unbiased=False, eps added to std, not var).
    mean = jnp.mean(x, axis=-1, keepdims=True)
    std = jnp.sqrt(jnp.mean((x - mean) ** 2, axis=-1, keepdims=True))
    ref = gamma * (x - mean) / (std + EPS) + beta

    assert y.shape == x.shape and y.dtype == x.dtype
    assert jnp.allclose(y, ref, atol=1e-4, rtol=1e-4), float(jnp.max(jnp.abs(y - ref)))

    print("KERNEL_OK")
</pallas_src>

<mosaic_0001>
module attributes {stable_mosaic.version = 11 : i64} {
  func.func @_layernorm_kernel(%arg0: i32, %arg1: memref<16x768xf32, #tpu.memory_space<vmem>>, %arg2: memref<1x768xf32, #tpu.memory_space<vmem>>, %arg3: memref<1x768xf32, #tpu.memory_space<vmem>>, %arg4: memref<16x768xf32, #tpu.memory_space<vmem>>) attributes {dimension_semantics = [#tpu.dimension_semantics<parallel>], iteration_bounds = array<i64: 1>, scalar_prefetch = 0 : i64, scratch_operands = 0 : i64, tpu.core_type = #tpu.core_type<tc>, window_params = [{transform_indices = @transform_0, window_bounds = array<i64: 16, 768>}, {pipeline_mode = #tpu.pipeline_mode<synchronous>, transform_indices = @transform_1, window_bounds = array<i64: 1, 768>}, {pipeline_mode = #tpu.pipeline_mode<synchronous>, transform_indices = @transform_2, window_bounds = array<i64: 1, 768>}, {transform_indices = @transform_3, window_bounds = array<i64: 16, 768>}]} {
    %c0 = arith.constant 0 : index
    %c0_0 = arith.constant 0 : index
    %0 = vector.load %arg1[%c0, %c0_0] : memref<16x768xf32, #tpu.memory_space<vmem>>, vector<16x768xf32>
    %cst = arith.constant dense<0.000000e+00> : vector<16xf32>
    %1 = vector.multi_reduction <add>, %0, %cst [1] : vector<16x768xf32> to vector<16xf32>
    %2 = vector.shape_cast %1 : vector<16xf32> to vector<16x1xf32>
    %cst_1 = arith.constant 0.00130208337 : f32
    %3 = vector.broadcast %cst_1 : f32 to vector<16x1xf32>
    %4 = arith.mulf %2, %3 : vector<16x1xf32>
    %5 = arith.mulf %0, %0 : vector<16x768xf32>
    %cst_2 = arith.constant dense<0.000000e+00> : vector<16xf32>
    %6 = vector.multi_reduction <add>, %5, %cst_2 [1] : vector<16x768xf32> to vector<16xf32>
    %7 = vector.shape_cast %6 : vector<16xf32> to vector<16x1xf32>
    %cst_3 = arith.constant 0.00130208337 : f32
    %8 = vector.broadcast %cst_3 : f32 to vector<16x1xf32>
    %9 = arith.mulf %7, %8 : vector<16x1xf32>
    %10 = arith.mulf %4, %4 : vector<16x1xf32>
    %11 = arith.subf %9, %10 : vector<16x1xf32>
    %cst_4 = arith.constant 0.000000e+00 : f32
    %12 = vector.broadcast %cst_4 : f32 to vector<16x1xf32>
    %13 = arith.maximumf %11, %12 : vector<16x1xf32>
    %14 = math.sqrt %13 : vector<16x1xf32>
    %cst_5 = arith.constant 9.99999997E-7 : f32
    %15 = vector.broadcast %cst_5 : f32 to vector<16x1xf32>
    %16 = arith.addf %14, %15 : vector<16x1xf32>
    %17 = tpu.reciprocal %16 {approx = true} : vector<16x1xf32> -> vector<16x1xf32>
    %18 = arith.mulf %16, %17 : vector<16x1xf32>
    %cst_6 = arith.constant 2.000000e+00 : f32
    %19 = vector.broadcast %cst_6 : f32 to vector<16x1xf32>
    %20 = arith.subf %19, %18 : vector<16x1xf32>
    %21 = arith.mulf %17, %20 : vector<16x1xf32>
    %c0_7 = arith.constant 0 : index
    %c0_8 = arith.constant 0 : index
    %22 = vector.load %arg2[%c0_7, %c0_8] : memref<1x768xf32, #tpu.memory_space<vmem>>, vector<1x768xf32>
    %c0_9 = arith.constant 0 : index
    %c0_10 = arith.constant 0 : index
    %23 = vector.load %arg3[%c0_9, %c0_10] : memref<1x768xf32, #tpu.memory_space<vmem>>, vector<1x768xf32>
    %24 = vector.broadcast %4 : vector<16x1xf32> to vector<16x768xf32>
    %25 = arith.subf %0, %24 : vector<16x768xf32>
    %26 = vector.broadcast %21 : vector<16x1xf32> to vector<16x768xf32>
    %27 = arith.mulf %25, %26 : vector<16x768xf32>
    %28 = vector.broadcast %22 : vector<1x768xf32> to vector<16x768xf32>
    %29 = arith.mulf %27, %28 : vector<16x768xf32>
    %30 = vector.broadcast %23 : vector<1x768xf32> to vector<16x768xf32>
    %31 = arith.addf %29, %30 : vector<16x768xf32>
    %c0_11 = arith.constant 0 : index
    %c0_12 = arith.constant 0 : index
    %32 = vector.load %arg4[%c0_11, %c0_12] : memref<16x768xf32, #tpu.memory_space<vmem>>, vector<16x768xf32>
    tpu.vector_store %arg4[%c0_11, %c0_12], %31 {strides = array<i32>} : memref<16x768xf32, #tpu.memory_space<vmem>>, vector<16x768xf32>,
    return
  }
  func.func @transform_0(%arg0: i32) -> (i32, i32) {
    %c0_i32 = arith.constant 0 : i32
    %c0_i32_0 = arith.constant 0 : i32
    return %arg0, %c0_i32 : i32, i32
  }
  func.func @transform_1(%arg0: i32) -> (i32, i32) {
    %c0_i32 = arith.constant 0 : i32
    %c0_i32_0 = arith.constant 0 : i32
    %c0_i32_1 = arith.constant 0 : i32
    return %c0_i32, %c0_i32_0 : i32, i32
  }
  func.func @transform_2(%arg0: i32) -> (i32, i32) {
    %c0_i32 = arith.constant 0 : i32
    %c0_i32_0 = arith.constant 0 : i32
    %c0_i32_1 = arith.constant 0 : i32
    return %c0_i32, %c0_i32_0 : i32, i32
  }
  func.func @transform_3(%arg0: i32) -> (i32, i32) {
    %c0_i32 = arith.constant 0 : i32
    %c0_i32_0 = arith.constant 0 : i32
    return %arg0, %c0_i32 : i32, i32
  }
}

</mosaic_0001>

<bundles_post_ra>
// kernel: tpu_custom_call.1
= control target key start
LH: loop header
LB: loop body
LE: loop exit
PB: predicated region body
PF: predicated region fallthrough
CT: control target
= control target key end

     0   :  { %8 = vsyncpa [#allocation3], 0  ;;  %s528_s0 = inlined_call_operand.hbm [shape: f32[16,768], index: 0, kind: input, shape index: {}]   ;;  %s529_s1 = inlined_call_operand.hbm [shape: f32[1,768], index: 1, kind: input, shape index: {}]   ;;  %s530_s2 = inlined_call_operand.hbm [shape: f32[1,768], index: 2, kind: input, shape index: {}]   ;;  %s531_s3 = inlined_call_operand.hbm [shape: f32[16,768], index: 3, kind: output, shape index: {}]  }
   0x1   :  { %9 = vsyncpa [#allocation6], 0 }
   0x2   :  { %10 = vsyncpa [#allocation4], 0  ;;  %s380_s12 = smov [#allocation5]   ;;  %s381_s14 = smov [#allocation2]  }
   0x3   :  { %s29_s13 = sshll.u32 %s380_s12, 4  ;;  %s16_s15 = sshll.u32 %s381_s14, 4  ;;  %s30_s13 = int_to_ptr.vmem [resolvable:$true] %s29_s13  ;;  %s17_s15 = int_to_ptr.vmem [resolvable:$true] %s16_s15 }
   0x4   :  { %s302_s16 = scalar_lea.vmem %s30_s13, 96  ;;  %p307_p1 = scmp.lt.s32.totalorder %s30_s13, %s30_s13 }
   0x5   :  { %p303_p0 = scmp.ne.s32.totalorder %s30_s13, %s302_s16  ;;  %p308_p2 = scmp.lt.s32.totalorder %s302_s16, %s302_s16 }
   0x7   :  { %p309_p3 = por %p308_p2, %p307_p1 }
   0x9   :  { %p310_p4 = pnand %p309_p3, %p303_p0 }
   0xb   :  { %313 = shalt.err (!%p310_p4)
}
   0xc   :  { %32 = dma.hbm_to_vmem [thread:$0]  %s529_s1, 96, %s30_s13, [#allocation6]  }
   0xd   :  { %s322_s19 = scalar_lea.vmem %s17_s15, 1536  ;;  %p327_p6 = scmp.lt.s32.totalorder %s17_s15, %s17_s15 }
   0xe   :  { %p323_p5 = scmp.ne.s32.totalorder %s17_s15, %s322_s19  ;;  %p328_p7 = scmp.lt.s32.totalorder %s322_s19, %s322_s19 }
  0x10   :  { %p329_p8 = por %p328_p7, %p327_p6 }
  0x12   :  { %p330_p9 = pnand %p329_p8, %p323_p5 }
  0x14   :  { %333 = shalt.err (!%p330_p9)
}
  0x15   :  { %s382_s20 = smov 768   ;;  %s383_s21 = smov 48  }
  0x16   :  { %22 = dma.hbm_to_vmem [thread:$0]  %s528_s0, 1536, %s17_s15, [#allocation3], %s382_s20, %s382_s20, %s383_s21  }
  0x17   :  { %s384_s24 = smov [#allocation7]  }
  0x18   :  { %s39_s25 = sshll.u32 %s384_s24, 4  ;;  %s40_s25 = int_to_ptr.vmem [resolvable:$true] %s39_s25 }
  0x19   :  { %s342_s1 = scalar_lea.vmem %s40_s25, 96  ;;  %p347_p11 = scmp.lt.s32.totalorder %s40_s25, %s40_s25 }
  0x1a   :  { %p343_p10 = scmp.ne.s32.totalorder %s40_s25, %s342_s1  ;;  %p348_p12 = scmp.lt.s32.totalorder %s342_s1, %s342_s1 }
  0x1c   :  { %p349_p13 = por %p348_p12, %p347_p11 }
  0x1e   :  { %p350_p0 = pnand %p349_p13, %p343_p10 }
  0x20   :  { %353 = shalt.err (!%p350_p0)
}
  0x21   :  { %42 = dma.hbm_to_vmem [thread:$0]  %s530_s2, 96, %s40_s25, [#allocation6]  }
  0x22   :  { %374 = dma.done.wait [#allocation3], 1536  }
  0x23   :  { %375 = vsyncadd [#allocation3], 4294965760 }
  0x24   :  { %376 = dma.done.wait [#allocation6], 192  }
  0x25   :  { %377 = vsyncadd [#allocation6], 4294967104  ;;  %v418_v0 = vld [vmem:[#allocation2] sm:$0xff]  ;;  %v420_v1 = vld [vmem:[#allocation2 + $0x8] sm:$0xff]  ;;  %s385_s0 = smov [#allocation8]  }
  0x26   :  { %v422_v2 = vld [vmem:[#allocation2 + $0x10] sm:$0xff]  ;;  %v424_v3 = vld [vmem:[#allocation2 + $0x18] sm:$0xff]  ;;  %v426_v4 = vld [vmem:[#allocation2 + $0x20] sm:$0xff]  ;;  %v64_v5 = vadd.f32 %v420_v1, %v418_v0  ;;  %v80_v6 = vmul.f32 %v418_v0, %v418_v0  ;;  %v81_v7 = vmul.f32 %v420_v1, %v420_v1  ;;  %s267_s2 = sshll.u32 %s385_s0, 4  ;;  %s268_s2 = int_to_ptr.vmem [resolvable:$true] %s267_s2 }
  0x27   :  { %v82_v8 = vmul.f32 %v422_v2, %v422_v2  ;;  %v83_v9 = vmul.f32 %v424_v3, %v424_v3  ;;  %v438_v10 = vld [vmem:[#allocation2 + $0x30] sm:$0xff]  ;;  %v440_v11 = vld [vmem:[#allocation2 + $0x38] sm:$0xff]  ;;  %v442_v12 = vld [vmem:[#allocation2 + $0x40] sm:$0xff]  ;;  %v84_v22 = vmul.f32 %v426_v4, %v426_v4  ;;  %s354_s28 = scalar_lea.vmem %s268_s2, 1536  ;;  %p359_p2 = scmp.lt.s32.totalorder %s268_s2, %s268_s2 }
  0x28   :  { %v65_v13 = vadd.f32 %v64_v5, %v422_v2  ;;  %v92_v14 = vadd.f32 %v81_v7, %v80_v6  ;;  %v445_v15 = vld [vmem:[#allocation2 + $0x48] sm:$0xff]  ;;  %v71_v16 = vadd.f32 %v440_v11, %v438_v10  ;;  %v86_v17 = vmul.f32 %v438_v10, %v438_v10  ;;  %v460_v24 = vld [vmem:[#allocation2 + $0x50] sm:$0xff]  ;;  %v468_v31 = vld [vmem:[#allocation2 + $0x58] sm:$0xff]  ;;  %p355_p1 = scmp.ne.s32.totalorder %s268_s2, %s354_s28  ;;  %p360_p3 = scmp.lt.s32.totalorder %s354_s28, %s354_s28 }
  0x29   :  { %v451_v18 = vld [vmem:[#allocation2 + $0x28] sm:$0xff]  ;;  %v87_v19 = vmul.f32 %v440_v11, %v440_v11  ;;  %v88_v20 = vmul.f32 %v442_v12, %v442_v12  ;;  %v89_v26 = vmul.f32 %v445_v15, %v445_v15  ;;  %v90_v33 = vmul.f32 %v460_v24, %v460_v24 }
  0x2a   :  { %v66_v21 = vadd.f32 %v65_v13, %v424_v3  ;;  %v93_v23 = vadd.f32 %v92_v14, %v82_v8  ;;  %v72_v25 = vadd.f32 %v71_v16, %v442_v12  ;;  %v85_v29 = vmul.f32 %v451_v18, %v451_v18  ;;  %p361_p4 = por %p360_p3, %p359_p2 }
  0x2b   :  { %v99_v27 = vadd.f32 %v87_v19, %v86_v17  ;;  %v91_v38 = vmul.f32 %v468_v31, %v468_v31  ;;  %v165_v8 = vlaneseq }
  0x2c   :  { %v67_v28 = vadd.f32 %v66_v21, %v426_v4  ;;  %v94_v30 = vadd.f32 %v93_v23, %v83_v9  ;;  %v73_v32 = vadd.f32 %v72_v25, %v445_v15  ;;  %p362_p5 = pnand %p361_p4, %p355_p1 }
  0x2d   :  { %v100_v34 = vadd.f32 %v99_v27, %v88_v20  ;;  %v166_v16 = vshrl.u32 %v165_v8, 7  ;;  %v138_v20 = vld [vmem:[#allocation5] sm:$0x3f] }
  0x2e   :  { %v68_v35 = vadd.f32 %v67_v28, %v451_v18  ;;  %v95_v36 = vadd.f32 %v94_v30, %v84_v22  ;;  %v74_v37 = vadd.f32 %v73_v32, %v460_v24 }
  0x2f   :  { %v101_v39 = vadd.f32 %v100_v34, %v89_v26  ;;  %v167_v17 = vsub.s32 0, %v166_v16  ;;  %v171_v19 = vsub.s32 1, %v166_v16  ;;  %v175_v21 = vsub.s32 2, %v166_v16  ;;  %v139_v26 = vld [vmem:[#allocation7] sm:$0x3f] }
  0x30   :  { %69 = vadd.xlane.f32.xlu0 %v68_v35  ;;  %v96_v40 = vadd.f32 %v95_v36, %v85_v29  ;;  %v75_v41 = vadd.f32 %v74_v37, %v468_v31  ;;  %v179_v22 = vsub.s32 3, %v166_v16  ;;  %v183_v23 = vsub.s32 4, %v166_v16 }
  0x31   :  { %v102_v42 = vadd.f32 %v101_v39, %v90_v33  ;;  %v187_v25 = vsub.s32 5, %v166_v16  ;;  %v168_v28 = vrot.slane %v138_v20, %v167_v17  ;;  %v172_v29 = vrot.slane %v138_v20, %v171_v19 }
  0x32   :  { %97 = vadd.xlane.f32.xlu1 %v96_v40  ;;  %v486_v30 = vrot.slane %v138_v20, %v175_v21  ;;  %v488_v32 = vrot.slane %v138_v20, %v179_v22  ;;  %v490_v33 = vrot.slane %v138_v20, %v183_v23  ;;  %v211_v36 = vrot.slane %v139_v26, %v167_v17 }
  0x33   :  { %v103_v43 = vadd.f32 %v102_v42, %v91_v38  ;;  %v188_v35 = vrot.slane %v138_v20, %v187_v25  ;;  %v215_v37 = vrot.slane %v139_v26, %v171_v19  ;;  %v219_v38 = vrot.slane %v139_v26, %v175_v21 }
  0x34   :  { %76 = vadd.xlane.f32.xlu0 %v75_v41  ;;  %v223_v39 = vrot.slane %v139_v26, %v179_v22  ;;  %v227_v40 = vrot.slane %v139_v26, %v183_v23  ;;  %v231_v41 = vrot.slane %v139_v26, %v187_v25 }
  0x36   :  { %104 = vadd.xlane.f32.xlu1 %v103_v43 }
  0xb9   :  { %v70_v44 = vpop.xlane.xlu0 %69 }
  0xba   :  { %v478_v45 = vmul.f32 0.0013020834, %v70_v44 }
  0xbb   :  { %v98_v46 = vpop.xlane.xlu1 %97 }
  0xbc   :  { %v106_v47 = vmul.f32 0.0013020834, %v98_v46  ;;  %v108_v48 = vmul.f32 %v478_v45, %v478_v45  ;;  %v140_v43 = vsub.f32 %v418_v0, %v478_v45  ;;  %v141_v44 = vsub.f32 %v420_v1, %v478_v45 }
  0xbd   :  { %v77_v49 = vpop.xlane.xlu0 %76  ;;  %v142_v46 = vsub.f32 %v422_v2, %v478_v45 }
  0xbe   :  { %v482_v50 = vmul.f32 0.0013020834, %v77_v49  ;;  %v110_v51 = vsub.f32 %v106_v47, %v108_v48  ;;  %v143_v47 = vsub.f32 %v424_v3, %v478_v45  ;;  %v144_v49 = vsub.f32 %v426_v4, %v478_v45 }
  0xbf   :  { %v105_v52 = vpop.xlane.xlu1 %104 }
  0xc0   :  { %v112_v53 = vmax.f32 %v110_v51, 0.0  ;;  %v107_v54 = vmul.f32 0.0013020834, %v105_v52  ;;  %v109_v55 = vmul.f32 %v482_v50, %v482_v50  ;;  %v145_v51 = vsub.f32 %v451_v18, %v478_v45 }
  0xc1   :  { %v146_v0 = vsub.f32 %v438_v10, %v482_v50  ;;  %v147_v1 = vsub.f32 %v440_v11, %v482_v50  ;;  %v148_v2 = vsub.f32 %v442_v12, %v482_v50  ;;  %v149_v3 = vsub.f32 %v445_v15, %v482_v50 }
  0xc2   :  { %286 = vrsqrt.f32 %v112_v53  ;;  %v111_v56 = vsub.f32 %v107_v54, %v109_v55  ;;  %vm116_vm0 = vcmp.eq.f32.partialorder %v112_v53, inf  ;;  %v119_v60 = vand.u32 2147483648, %v112_v53 }
  0xc3   :  { %vm118_vm1 = vcmp.eq.f32.partialorder %v112_v53, 0.0  ;;  %v150_v45 = vsub.f32 %v460_v24, %v482_v50 }
  0xc4   :  { %v113_v57 = vmax.f32 %v111_v56, 0.0 }
  0xc6   :  { %288 = vrsqrt.f32 %v113_v57  ;;  %vm123_vm2 = vcmp.eq.f32.partialorder %v113_v57, inf  ;;  %v126_v7 = vand.u32 2147483648, %v113_v57  ;;  %vm125_vm3 = vcmp.eq.f32.partialorder %v113_v57, 0.0 }
  0xcf   :  { %v287_v58 = vpop.eup %286 }
  0xd0   :  { %v115_v59 = vmul.f32 %v287_v58, %v112_v53 }
  0xd2   :  { %v117_v61 = vsel %vm116_vm0, %v112_v53, %v115_v59 }
  0xd3   :  { %v120_v62 = vsel %vm118_vm1, %v119_v60, %v117_v61  ;;  %v289_v63 = vpop.eup %288  ;;  %v151_v61 = vsub.f32 %v468_v31, %v482_v50 }
  0xd4   :  { %v128_v5 = vadd.f32 1e-06, %v120_v62  ;;  %v122_v6 = vmul.f32 %v289_v63, %v113_v57 }
  0xd6   :  { %290 = vrcp.f32 %v128_v5  ;;  %v124_v9 = vsel %vm123_vm2, %v113_v57, %v122_v6 }
  0xd7   :  { %v127_v13 = vsel %vm125_vm3, %v126_v7, %v124_v9 }
  0xd8   :  { %v129_v14 = vadd.f32 1e-06, %v127_v13 }
  0xda   :  { %292 = vrcp.f32 %v129_v14 }
  0xe3   :  { %v291_v27 = vpop.eup %290 }
  0xe4   :  { %v132_v34 = vmul.f32 %v291_v27, %v128_v5 }
  0xe6   :  { %v134_v42 = vsub.f32 2.0, %v132_v34 }
  0xe7   :  { %v293_v48 = vpop.eup %292 }
  0xe8   :  { %v136_v52 = vmul.f32 %v291_v27, %v134_v42  ;;  %v133_v53 = vmul.f32 %v293_v48, %v129_v14 }
  0xea   :  { %v152_v54 = vmul.f32 %v140_v43, %v136_v52  ;;  %v153_v55 = vmul.f32 %v141_v44, %v136_v52  ;;  %v154_v4 = vmul.f32 %v142_v46, %v136_v52  ;;  %v155_v56 = vmul.f32 %v143_v47, %v136_v52 }
  0xeb   :  { %v156_v57 = vmul.f32 %v144_v49, %v136_v52  ;;  %v157_v18 = vmul.f32 %v145_v51, %v136_v52  ;;  %v135_v10 = vsub.f32 2.0, %v133_v53 }
  0xec   :  { %v195_v58 = vmul.f32 %v168_v28, %v152_v54  ;;  %v196_v59 = vmul.f32 %v172_v29, %v153_v55  ;;  %v197_v11 = vmul.f32 %v486_v30, %v154_v4  ;;  %v198_v12 = vmul.f32 %v488_v32, %v155_v56 }
  0xed   :  { %v199_v60 = vmul.f32 %v490_v33, %v156_v57  ;;  %v200_v15 = vmul.f32 %v188_v35, %v157_v18  ;;  %v137_v62 = vmul.f32 %v293_v48, %v135_v10 }
  0xee   :  { %v238_v63 = vadd.f32 %v211_v36, %v195_v58  ;;  %v239_v5 = vadd.f32 %v215_v37, %v196_v59  ;;  %v240_v6 = vadd.f32 %v219_v38, %v197_v11  ;;  %v241_v7 = vadd.f32 %v223_v39, %v198_v12 }
  0xef   :  { %v242_v8 = vadd.f32 %v227_v40, %v199_v60  ;;  %v243_v24 = vadd.f32 %v231_v41, %v200_v15  ;;  %v158_v9 = vmul.f32 %v146_v0, %v137_v62  ;;  %v159_v13 = vmul.f32 %v147_v1, %v137_v62 }
  0xf0   :  { %250 = vst [vmem:[#allocation8] sm:$0xff] %v238_v63  ;;  %251 = vst [vmem:[#allocation8 + $0x8] sm:$0xff] %v239_v5  ;;  %v160_v14 = vmul.f32 %v148_v2, %v137_v62  ;;  %v161_v16 = vmul.f32 %v149_v3, %v137_v62  ;;  %v162_v17 = vmul.f32 %v150_v45, %v137_v62 }
  0xf1   :  { %252 = vst [vmem:[#allocation8 + $0x10] sm:$0xff] %v240_v6  ;;  %253 = vst [vmem:[#allocation8 + $0x18] sm:$0xff] %v241_v7  ;;  %v163_v19 = vmul.f32 %v151_v61, %v137_v62  ;;  %v201_v31 = vmul.f32 %v168_v28, %v158_v9  ;;  %v202_v50 = vmul.f32 %v172_v29, %v159_v13 }
  0xf2   :  { %254 = vst [vmem:[#allocation8 + $0x20] sm:$0xff] %v242_v8  ;;  %255 = vst [vmem:[#allocation8 + $0x28] sm:$0xff] %v243_v24  ;;  %v203_v20 = vmul.f32 %v486_v30, %v160_v14  ;;  %v204_v21 = vmul.f32 %v488_v32, %v161_v16  ;;  %v205_v22 = vmul.f32 %v490_v33, %v162_v17 }
  0xf3   :  { %v206_v23 = vmul.f32 %v188_v35, %v163_v19  ;;  %v244_v25 = vadd.f32 %v211_v36, %v201_v31  ;;  %v245_v26 = vadd.f32 %v215_v37, %v202_v50 }
  0xf4   :  { %v246_v27 = vadd.f32 %v219_v38, %v203_v20  ;;  %v247_v34 = vadd.f32 %v223_v39, %v204_v21  ;;  %v248_v42 = vadd.f32 %v227_v40, %v205_v22 }
  0xf5   :  { %v249_v43 = vadd.f32 %v231_v41, %v206_v23  ;;  %256 = vst [vmem:[#allocation8 + $0x30] sm:$0xff] %v244_v25  ;;  %257 = vst [vmem:[#allocation8 + $0x38] sm:$0xff] %v245_v26 }
  0xf6   :  { %258 = vst [vmem:[#allocation8 + $0x40] sm:$0xff] %v246_v27  ;;  %259 = vst [vmem:[#allocation8 + $0x48] sm:$0xff] %v247_v34 }
  0xf7   :  { %260 = vst [vmem:[#allocation8 + $0x50] sm:$0xff] %v248_v42  ;;  %261 = vst [vmem:[#allocation8 + $0x58] sm:$0xff] %v249_v43 }
  0xf8   :  { %365 = shalt.err (!%p362_p5)
}
  0xf9   :  { %273 = dma.vmem_to_hbm [thread:$0]  %s268_s2, 1536, %s531_s3, [#allocation4], %s382_s20, %s382_s20, %s383_s21  }
  0xfa   :  { %378 = dma.done.wait [#allocation4], 1536  }
  0xfb   :  { %379 = vsyncadd [#allocation4], 4294965760 }
  0xfc   :  { %277 = vsyncpa [#allocation3], 1 }
  0xfd   :  { %278 = vsyncpa [#allocation6], 1 }
  0xfe   :  { %279 = vsyncpa [#allocation4], 1 }

</bundles_post_ra>
